<compile_context>
chip_gen: v7x
topology: tpu7x:2x2x1
jax: 0.10.0
libtpu: 0.0.40
codegen_flags: <defaults>
</compile_context>

<pallas_src>
import jax
import jax.numpy as jnp
from jax.experimental import pallas as pl
from jax.experimental.pallas import tpu as pltpu

IN_FEATURES = 2
HIDDEN = 8


def _round_up(n, m):
    return ((n + m - 1) // m) * m


def mlp_kernel(x_ref, w1_ref, b1_ref, w2_ref, b2_ref, o_ref):
    # x_ref: (2, 8, cols) VMEM -- feature-major, batch dense over (8 sublanes x cols lanes).
    # w1_ref: (2, HIDDEN) SMEM, b1_ref: (1, HIDDEN) SMEM,
    # w2_ref: (1, HIDDEN) SMEM, b2_ref: (1, 1) SMEM.
    # o_ref: (8, cols) VMEM -- sublane/lane-dense output tile (unmasked stores).
    x0 = x_ref[0]                                    # (8, cols)
    x1 = x_ref[1]                                    # (8, cols)

    # j = 0 term initializes the accumulator; b2 folded in (no zeros init / trailing add).
    h = jnp.maximum(x0 * w1_ref[0, 0] + x1 * w1_ref[1, 0] + b1_ref[0, 0], 0.0)
    acc = h * w2_ref[0, 0] + b2_ref[0, 0]
    # HIDDEN == 8: fully unrolled -> ~56 VPU ops per dense (8, cols) tile, pure streaming.
    for j in range(1, HIDDEN):
        h = jnp.maximum(x0 * w1_ref[0, j] + x1 * w1_ref[1, j] + b1_ref[0, j], 0.0)
        acc = acc + h * w2_ref[0, j]
    o_ref[...] = acc.astype(o_ref.dtype)


def my_neural_net_soa(x_t, w1, b1, w2, b2, *, block_lanes=512 * 1024):
    """Forward pass on SoA (feature-major) input.

    x_t: (2, B) float32 -- preferred layout; no wrapper-side HBM copies when B % 8 == 0.
    Returns (B, 1) float32.
    """
    in_f, B = x_t.shape
    assert in_f == IN_FEATURES

    # Sublane-dense view: (2, B) -> (2, 8, B/8). Contiguous reshape (no data movement);
    # only when B is not a multiple of 8 do we pad by <8 trailing batch elements.
    b8 = _round_up(max(B, 8), 8)
    if b8 != B:
        x_t = jnp.pad(x_t, ((0, 0), (0, b8 - B)))
    cols_total = b8 // 8
    x3 = x_t.reshape(IN_FEATURES, 8, cols_total)

    # Batch block: as many lanes as comfortably fit double-buffered in VMEM.
    # Working set ~= 2 * (64 + 32) * cols bytes; default cols = 64K -> ~12 MiB
    # (fits v7x's 64 MiB VMEM per core as well as v5e/v6e with the raised limit below).
    cols = max(128, (block_lanes // 8) // 128 * 128)   # multiple of 128 lanes
    cols = min(cols, cols_total)                       # or the full (small) extent
    n_blocks = pl.cdiv(cols_total, cols)               # ragged last block handled by Pallas

    x_blk_bytes = IN_FEATURES * 8 * cols * 4
    y_blk_bytes = 8 * cols * 4
    # Raise the scoped VMEM limit above v5e's 16 MiB default; keep v7x (<=64 MiB) in mind
    # if block_lanes is pushed past ~1M.
    vmem_limit = min(max(2 * (x_blk_bytes + y_blk_bytes) + (4 << 20), 32 << 20), 96 << 20)

    # Tiny params live in SMEM (loaded once, resident across the whole grid; scalar reads
    # broadcast against the batch vregs for free).
    b1_row = b1.reshape(1, HIDDEN)
    w2_row = w2.reshape(1, HIDDEN)                     # w2[j, 0] -> w2_row[0, j]
    b2_2d = b2.reshape(1, 1)
    smem = pl.BlockSpec(memory_space=pltpu.MemorySpace.SMEM)

    out = pl.pallas_call(
        mlp_kernel,
        out_shape=jax.ShapeDtypeStruct((8, cols_total), jnp.float32),
        grid=(n_blocks,),
        in_specs=[
            pl.BlockSpec((IN_FEATURES, 8, cols), lambda i: (0, 0, i)),  # pipelined x tile
            smem,  # w1  (resident for the whole grid)
            smem,  # b1
            smem,  # w2
            smem,  # b2
        ],
        out_specs=pl.BlockSpec((8, cols), lambda i: (0, i)),
        compiler_params=pltpu.CompilerParams(
            dimension_semantics=("parallel",),          # megacore: shard batch blocks
            vmem_limit_bytes=vmem_limit,
        ),
        cost_estimate=pl.CostEstimate(
            flops=7 * HIDDEN * b8,                      # VPU mul/add/max per batch element
            transcendentals=0,
            bytes_accessed=(IN_FEATURES + 1) * 4 * b8,  # 12 B / batch element
        ),
    )(x3, w1, b1_row, w2_row, b2_2d)

    # Back to the PyTorch-facing (B, 1) layout: contiguous reshape; the [:B] slice is a
    # no-op whenever B is already a multiple of 8.
    return out.reshape(b8)[:B].reshape(B, 1)


def my_neural_net(x, w1, b1, w2, b2, **kwargs):
    """PyTorch-facing forward: x is (B, 2) AoS, returns (B, 1).

    The (B, 2) -> (2, B) transpose here is one extra HBM pass; in a real pipeline the
    producer should emit the SoA layout and call my_neural_net_soa directly.
    """
    B, in_f = x.shape
    assert in_f == IN_FEATURES
    return my_neural_net_soa(x.T, w1, b1, w2, b2, **kwargs)


def init_params(key):
    """Deterministic init mimicking torch.nn.Linear (uniform +-1/sqrt(fan_in)).

    Weights stored as (in_features, out_features) = PyTorch weight transposed.
    """
    k1, k2, k3, k4 = jax.random.split(key, 4)
    in1, hid, out = IN_FEATURES, HIDDEN, 1
    bound1 = 1.0 / jnp.sqrt(in1)
    bound2 = 1.0 / jnp.sqrt(hid)
    w1 = jax.random.uniform(k1, (in1, hid), jnp.float32, -bound1, bound1)
    b1 = jax.random.uniform(k2, (hid,), jnp.float32, -bound1, bound1)
    w2 = jax.random.uniform(k3, (hid, out), jnp.float32, -bound2, bound2)
    b2 = jax.random.uniform(k4, (out,), jnp.float32, -bound2, bound2)
    return w1, b1, w2, b2


if __name__ == "__main__":
    key = jax.random.PRNGKey(0)
    w1, b1, w2, b2 = init_params(key)

    def ref_forward(x):
        h = jnp.maximum(x @ w1 + b1[None, :], 0.0)
        return h @ w2 + b2[None, :]

    # Same data as the reference script: x = [[2, 2], [3, 4], [5, 6], [7, 8]]
    x_small = jnp.array([[2.0, 2.0], [3.0, 4.0], [5.0, 6.0], [7.0, 8.0]], dtype=jnp.float32)
    out_small = jax.block_until_ready(my_neural_net(x_small, w1, b1, w2, b2))
    assert out_small.shape == (4, 1)
    assert jnp.allclose(out_small, ref_forward(x_small), atol=1e-5), (
        out_small, ref_forward(x_small))

    # Modest batch exercising the <8 tail pad, a multi-step grid, and a ragged last block.
    xb = jax.random.normal(jax.random.PRNGKey(1), (1037, IN_FEATURES), jnp.float32)
    out_b = jax.block_until_ready(my_neural_net(xb, w1, b1, w2, b2, block_lanes=1024))
    assert out_b.shape == (1037, 1)
    assert jnp.allclose(out_b, ref_forward(xb), atol=1e-4, rtol=1e-4)

    print("KERNEL_OK")
</pallas_src>

<mosaic_0001>
module attributes {stable_mosaic.version = 11 : i64} {
  func.func @mlp_kernel(%arg0: i32, %arg1: memref<2x8x1xf32, #tpu.memory_space<vmem>>, %arg2: memref<2x8xf32, #tpu.memory_space<smem>>, %arg3: memref<1x8xf32, #tpu.memory_space<smem>>, %arg4: memref<1x8xf32, #tpu.memory_space<smem>>, %arg5: memref<1x1xf32, #tpu.memory_space<smem>>, %arg6: memref<8x1xf32, #tpu.memory_space<vmem>>) attributes {dimension_semantics = [#tpu.dimension_semantics<parallel>], iteration_bounds = array<i64: 1>, scalar_prefetch = 0 : i64, scratch_operands = 0 : i64, tpu.core_type = #tpu.core_type<tc>, window_params = [{transform_indices = @transform_0, window_bounds = array<i64: 2, 8, 1>}, {transform_indices = @transform_1, window_bounds = array<i64: 2, 8>}, {transform_indices = @transform_2, window_bounds = array<i64: 1, 8>}, {transform_indices = @transform_3, window_bounds = array<i64: 1, 8>}, {transform_indices = @transform_4, window_bounds = array<i64: 1, 1>}, {transform_indices = @transform_5, window_bounds = array<i64: 8, 1>}]} {
    %c0 = arith.constant 0 : index
    %c0_0 = arith.constant 0 : index
    %c0_1 = arith.constant 0 : index
    %0 = vector.load %arg1[%c0, %c0_0, %c0_1] : memref<2x8x1xf32, #tpu.memory_space<vmem>>, vector<1x8x1xf32>
    %1 = vector.shape_cast %0 : vector<1x8x1xf32> to vector<8x1xf32>
    %c1 = arith.constant 1 : index
    %c0_2 = arith.constant 0 : index
    %c0_3 = arith.constant 0 : index
    %2 = vector.load %arg1[%c1, %c0_2, %c0_3] : memref<2x8x1xf32, #tpu.memory_space<vmem>>, vector<1x8x1xf32>
    %3 = vector.shape_cast %2 : vector<1x8x1xf32> to vector<8x1xf32>
    %c0_4 = arith.constant 0 : index
    %c0_5 = arith.constant 0 : index
    %4 = memref.load %arg2[%c0_4, %c0_5] : memref<2x8xf32, #tpu.memory_space<smem>>
    %5 = vector.broadcast %4 : f32 to vector<8x1xf32>
    %6 = arith.mulf %1, %5 : vector<8x1xf32>
    %c1_6 = arith.constant 1 : index
    %c0_7 = arith.constant 0 : index
    %7 = memref.load %arg2[%c1_6, %c0_7] : memref<2x8xf32, #tpu.memory_space<smem>>
    %8 = vector.broadcast %7 : f32 to vector<8x1xf32>
    %9 = arith.mulf %3, %8 : vector<8x1xf32>
    %10 = arith.addf %6, %9 : vector<8x1xf32>
    %c0_8 = arith.constant 0 : index
    %c0_9 = arith.constant 0 : index
    %11 = memref.load %arg3[%c0_8, %c0_9] : memref<1x8xf32, #tpu.memory_space<smem>>
    %12 = vector.broadcast %11 : f32 to vector<8x1xf32>
    %13 = arith.addf %10, %12 : vector<8x1xf32>
    %cst = arith.constant 0.000000e+00 : f32
    %14 = vector.broadcast %cst : f32 to vector<8x1xf32>
    %15 = arith.maximumf %13, %14 : vector<8x1xf32>
    %c0_10 = arith.constant 0 : index
    %c0_11 = arith.constant 0 : index
    %16 = memref.load %arg4[%c0_10, %c0_11] : memref<1x8xf32, #tpu.memory_space<smem>>
    %17 = vector.broadcast %16 : f32 to vector<8x1xf32>
    %18 = arith.mulf %15, %17 : vector<8x1xf32>
    %c0_12 = arith.constant 0 : index
    %c0_13 = arith.constant 0 : index
    %19 = memref.load %arg5[%c0_12, %c0_13] : memref<1x1xf32, #tpu.memory_space<smem>>
    %20 = vector.broadcast %19 : f32 to vector<8x1xf32>
    %21 = arith.addf %18, %20 : vector<8x1xf32>
    %c0_14 = arith.constant 0 : index
    %c1_15 = arith.constant 1 : index
    %22 = memref.load %arg2[%c0_14, %c1_15] : memref<2x8xf32, #tpu.memory_space<smem>>
    %23 = vector.broadcast %22 : f32 to vector<8x1xf32>
    %24 = arith.mulf %1, %23 : vector<8x1xf32>
    %c1_16 = arith.constant 1 : index
    %c1_17 = arith.constant 1 : index
    %25 = memref.load %arg2[%c1_16, %c1_17] : memref<2x8xf32, #tpu.memory_space<smem>>
    %26 = vector.broadcast %25 : f32 to vector<8x1xf32>
    %27 = arith.mulf %3, %26 : vector<8x1xf32>
    %28 = arith.addf %24, %27 : vector<8x1xf32>
    %c0_18 = arith.constant 0 : index
    %c1_19 = arith.constant 1 : index
    %29 = memref.load %arg3[%c0_18, %c1_19] : memref<1x8xf32, #tpu.memory_space<smem>>
    %30 = vector.broadcast %29 : f32 to vector<8x1xf32>
    %31 = arith.addf %28, %30 : vector<8x1xf32>
    %cst_20 = arith.constant 0.000000e+00 : f32
    %32 = vector.broadcast %cst_20 : f32 to vector<8x1xf32>
    %33 = arith.maximumf %31, %32 : vector<8x1xf32>
    %c0_21 = arith.constant 0 : index
    %c1_22 = arith.constant 1 : index
    %34 = memref.load %arg4[%c0_21, %c1_22] : memref<1x8xf32, #tpu.memory_space<smem>>
    %35 = vector.broadcast %34 : f32 to vector<8x1xf32>
    %36 = arith.mulf %33, %35 : vector<8x1xf32>
    %37 = arith.addf %21, %36 : vector<8x1xf32>
    %c0_23 = arith.constant 0 : index
    %c2 = arith.constant 2 : index
    %38 = memref.load %arg2[%c0_23, %c2] : memref<2x8xf32, #tpu.memory_space<smem>>
    %39 = vector.broadcast %38 : f32 to vector<8x1xf32>
    %40 = arith.mulf %1, %39 : vector<8x1xf32>
    %c1_24 = arith.constant 1 : index
    %c2_25 = arith.constant 2 : index
    %41 = memref.load %arg2[%c1_24, %c2_25] : memref<2x8xf32, #tpu.memory_space<smem>>
    %42 = vector.broadcast %41 : f32 to vector<8x1xf32>
    %43 = arith.mulf %3, %42 : vector<8x1xf32>
    %44 = arith.addf %40, %43 : vector<8x1xf32>
    %c0_26 = arith.constant 0 : index
    %c2_27 = arith.constant 2 : index
    %45 = memref.load %arg3[%c0_26, %c2_27] : memref<1x8xf32, #tpu.memory_space<smem>>
    %46 = vector.broadcast %45 : f32 to vector<8x1xf32>
    %47 = arith.addf %44, %46 : vector<8x1xf32>
    %cst_28 = arith.constant 0.000000e+00 : f32
    %48 = vector.broadcast %cst_28 : f32 to vector<8x1xf32>
    %49 = arith.maximumf %47, %48 : vector<8x1xf32>
    %c0_29 = arith.constant 0 : index
    %c2_30 = arith.constant 2 : index
    %50 = memref.load %arg4[%c0_29, %c2_30] : memref<1x8xf32, #tpu.memory_space<smem>>
    %51 = vector.broadcast %50 : f32 to vector<8x1xf32>
    %52 = arith.mulf %49, %51 : vector<8x1xf32>
    %53 = arith.addf %37, %52 : vector<8x1xf32>
    %c0_31 = arith.constant 0 : index
    %c3 = arith.constant 3 : index
    %54 = memref.load %arg2[%c0_31, %c3] : memref<2x8xf32, #tpu.memory_space<smem>>
    %55 = vector.broadcast %54 : f32 to vector<8x1xf32>
    %56 = arith.mulf %1, %55 : vector<8x1xf32>
    %c1_32 = arith.constant 1 : index
    %c3_33 = arith.constant 3 : index
    %57 = memref.load %arg2[%c1_32, %c3_33] : memref<2x8xf32, #tpu.memory_space<smem>>
    %58 = vector.broadcast %57 : f32 to vector<8x1xf32>
    %59 = arith.mulf %3, %58 : vector<8x1xf32>
    %60 = arith.addf %56, %59 : vector<8x1xf32>
    %c0_34 = arith.constant 0 : index
    %c3_35 = arith.constant 3 : index
    %61 = memref.load %arg3[%c0_34, %c3_35] : memref<1x8xf32, #tpu.memory_space<smem>>
    %62 = vector.broadcast %61 : f32 to vector<8x1xf32>
    %63 = arith.addf %60, %62 : vector<8x1xf32>
    %cst_36 = arith.constant 0.000000e+00 : f32
    %64 = vector.broadcast %cst_36 : f32 to vector<8x1xf32>
    %65 = arith.maximumf %63, %64 : vector<8x1xf32>
    %c0_37 = arith.constant 0 : index
    %c3_38 = arith.constant 3 : index
    %66 = memref.load %arg4[%c0_37, %c3_38] : memref<1x8xf32, #tpu.memory_space<smem>>
    %67 = vector.broadcast %66 : f32 to vector<8x1xf32>
    %68 = arith.mulf %65, %67 : vector<8x1xf32>
    %69 = arith.addf %53, %68 : vector<8x1xf32>
    %c0_39 = arith.constant 0 : index
    %c4 = arith.constant 4 : index
    %70 = memref.load %arg2[%c0_39, %c4] : memref<2x8xf32, #tpu.memory_space<smem>>
    %71 = vector.broadcast %70 : f32 to vector<8x1xf32>
    %72 = arith.mulf %1, %71 : vector<8x1xf32>
    %c1_40 = arith.constant 1 : index
    %c4_41 = arith.constant 4 : index
    %73 = memref.load %arg2[%c1_40, %c4_41] : memref<2x8xf32, #tpu.memory_space<smem>>
    %74 = vector.broadcast %73 : f32 to vector<8x1xf32>
    %75 = arith.mulf %3, %74 : vector<8x1xf32>
    %76 = arith.addf %72, %75 : vector<8x1xf32>
    %c0_42 = arith.constant 0 : index
    %c4_43 = arith.constant 4 : index
    %77 = memref.load %arg3[%c0_42, %c4_43] : memref<1x8xf32, #tpu.memory_space<smem>>
    %78 = vector.broadcast %77 : f32 to vector<8x1xf32>
    %79 = arith.addf %76, %78 : vector<8x1xf32>
    %cst_44 = arith.constant 0.000000e+00 : f32
    %80 = vector.broadcast %cst_44 : f32 to vector<8x1xf32>
    %81 = arith.maximumf %79, %80 : vector<8x1xf32>
    %c0_45 = arith.constant 0 : index
    %c4_46 = arith.constant 4 : index
    %82 = memref.load %arg4[%c0_45, %c4_46] : memref<1x8xf32, #tpu.memory_space<smem>>
    %83 = vector.broadcast %82 : f32 to vector<8x1xf32>
    %84 = arith.mulf %81, %83 : vector<8x1xf32>
    %85 = arith.addf %69, %84 : vector<8x1xf32>
    %c0_47 = arith.constant 0 : index
    %c5 = arith.constant 5 : index
    %86 = memref.load %arg2[%c0_47, %c5] : memref<2x8xf32, #tpu.memory_space<smem>>
    %87 = vector.broadcast %86 : f32 to vector<8x1xf32>
    %88 = arith.mulf %1, %87 : vector<8x1xf32>
    %c1_48 = arith.constant 1 : index
    %c5_49 = arith.constant 5 : index
    %89 = memref.load %arg2[%c1_48, %c5_49] : memref<2x8xf32, #tpu.memory_space<smem>>
    %90 = vector.broadcast %89 : f32 to vector<8x1xf32>
    %91 = arith.mulf %3, %90 : vector<8x1xf32>
    %92 = arith.addf %88, %91 : vector<8x1xf32>
    %c0_50 = arith.constant 0 : index
    %c5_51 = arith.constant 5 : index
    %93 = memref.load %arg3[%c0_50, %c5_51] : memref<1x8xf32, #tpu.memory_space<smem>>
    %94 = vector.broadcast %93 : f32 to vector<8x1xf32>
    %95 = arith.addf %92, %94 : vector<8x1xf32>
    %cst_52 = arith.constant 0.000000e+00 : f32
    %96 = vector.broadcast %cst_52 : f32 to vector<8x1xf32>
    %97 = arith.maximumf %95, %96 : vector<8x1xf32>
    %c0_53 = arith.constant 0 : index
    %c5_54 = arith.constant 5 : index
    %98 = memref.load %arg4[%c0_53, %c5_54] : memref<1x8xf32, #tpu.memory_space<smem>>
    %99 = vector.broadcast %98 : f32 to vector<8x1xf32>
    %100 = arith.mulf %97, %99 : vector<8x1xf32>
    %101 = arith.addf %85, %100 : vector<8x1xf32>
    %c0_55 = arith.constant 0 : index
    %c6 = arith.constant 6 : index
    %102 = memref.load %arg2[%c0_55, %c6] : memref<2x8xf32, #tpu.memory_space<smem>>
    %103 = vector.broadcast %102 : f32 to vector<8x1xf32>
    %104 = arith.mulf %1, %103 : vector<8x1xf32>
    %c1_56 = arith.constant 1 : index
    %c6_57 = arith.constant 6 : index
    %105 = memref.load %arg2[%c1_56, %c6_57] : memref<2x8xf32, #tpu.memory_space<smem>>
    %106 = vector.broadcast %105 : f32 to vector<8x1xf32>
    %107 = arith.mulf %3, %106 : vector<8x1xf32>
    %108 = arith.addf %104, %107 : vector<8x1xf32>
    %c0_58 = arith.constant 0 : index
    %c6_59 = arith.constant 6 : index
    %109 = memref.load %arg3[%c0_58, %c6_59] : memref<1x8xf32, #tpu.memory_space<smem>>
    %110 = vector.broadcast %109 : f32 to vector<8x1xf32>
    %111 = arith.addf %108, %110 : vector<8x1xf32>
    %cst_60 = arith.constant 0.000000e+00 : f32
    %112 = vector.broadcast %cst_60 : f32 to vector<8x1xf32>
    %113 = arith.maximumf %111, %112 : vector<8x1xf32>
    %c0_61 = arith.constant 0 : index
    %c6_62 = arith.constant 6 : index
    %114 = memref.load %arg4[%c0_61, %c6_62] : memref<1x8xf32, #tpu.memory_space<smem>>
    %115 = vector.broadcast %114 : f32 to vector<8x1xf32>
    %116 = arith.mulf %113, %115 : vector<8x1xf32>
    %117 = arith.addf %101, %116 : vector<8x1xf32>
    %c0_63 = arith.constant 0 : index
    %c7 = arith.constant 7 : index
    %118 = memref.load %arg2[%c0_63, %c7] : memref<2x8xf32, #tpu.memory_space<smem>>
    %119 = vector.broadcast %118 : f32 to vector<8x1xf32>
    %120 = arith.mulf %1, %119 : vector<8x1xf32>
    %c1_64 = arith.constant 1 : index
    %c7_65 = arith.constant 7 : index
    %121 = memref.load %arg2[%c1_64, %c7_65] : memref<2x8xf32, #tpu.memory_space<smem>>
    %122 = vector.broadcast %121 : f32 to vector<8x1xf32>
    %123 = arith.mulf %3, %122 : vector<8x1xf32>
    %124 = arith.addf %120, %123 : vector<8x1xf32>
    %c0_66 = arith.constant 0 : index
    %c7_67 = arith.constant 7 : index
    %125 = memref.load %arg3[%c0_66, %c7_67] : memref<1x8xf32, #tpu.memory_space<smem>>
    %126 = vector.broadcast %125 : f32 to vector<8x1xf32>
    %127 = arith.addf %124, %126 : vector<8x1xf32>
    %cst_68 = arith.constant 0.000000e+00 : f32
    %128 = vector.broadcast %cst_68 : f32 to vector<8x1xf32>
    %129 = arith.maximumf %127, %128 : vector<8x1xf32>
    %c0_69 = arith.constant 0 : index
    %c7_70 = arith.constant 7 : index
    %130 = memref.load %arg4[%c0_69, %c7_70] : memref<1x8xf32, #tpu.memory_space<smem>>
    %131 = vector.broadcast %130 : f32 to vector<8x1xf32>
    %132 = arith.mulf %129, %131 : vector<8x1xf32>
    %133 = arith.addf %117, %132 : vector<8x1xf32>
    %c0_71 = arith.constant 0 : index
    %c0_72 = arith.constant 0 : index
    %134 = vector.load %arg6[%c0_71, %c0_72] : memref<8x1xf32, #tpu.memory_space<vmem>>, vector<8x1xf32>
    tpu.vector_store %arg6[%c0_71, %c0_72], %133 {strides = array<i32>} : memref<8x1xf32, #tpu.memory_space<vmem>>, vector<8x1xf32>,
    return
  }
  func.func @transform_0(%arg0: i32) -> (i32, i32, i32) {
    %c0_i32 = arith.constant 0 : i32
    %c0_i32_0 = arith.constant 0 : i32
    %c0_i32_1 = arith.constant 0 : i32
    return %c0_i32, %c0_i32_0, %arg0 : i32, i32, i32
  }
  func.func @transform_1(%arg0: i32) -> (i32, i32) {
    %c0_i32 = arith.constant 0 : i32
    %c0_i32_0 = arith.constant 0 : i32
    %c0_i32_1 = arith.constant 0 : i32
    return %c0_i32, %c0_i32_0 : i32, i32
  }
  func.func @transform_2(%arg0: i32) -> (i32, i32) {
    %c0_i32 = arith.constant 0 : i32
    %c0_i32_0 = arith.constant 0 : i32
    %c0_i32_1 = arith.constant 0 : i32
    return %c0_i32, %c0_i32_0 : i32, i32
  }
  func.func @transform_3(%arg0: i32) -> (i32, i32) {
    %c0_i32 = arith.constant 0 : i32
    %c0_i32_0 = arith.constant 0 : i32
    %c0_i32_1 = arith.constant 0 : i32
    return %c0_i32, %c0_i32_0 : i32, i32
  }
  func.func @transform_4(%arg0: i32) -> (i32, i32) {
    %c0_i32 = arith.constant 0 : i32
    %c0_i32_0 = arith.constant 0 : i32
    %c0_i32_1 = arith.constant 0 : i32
    return %c0_i32, %c0_i32_0 : i32, i32
  }
  func.func @transform_5(%arg0: i32) -> (i32, i32) {
    %c0_i32 = arith.constant 0 : i32
    %c0_i32_0 = arith.constant 0 : i32
    return %c0_i32, %arg0 : i32, i32
  }
}

</mosaic_0001>

<bundles_post_ra>
// kernel: tpu_custom_call.1
= control target key start
LH: loop header
LB: loop body
LE: loop exit
PB: predicated region body
PF: predicated region fallthrough
CT: control target
= control target key end

     0   :  { %11 = vsyncpa [#allocation4], 0  ;;  %s412_s0 = inlined_call_operand.vmem [shape: f32[2,8,1], index: 0, kind: input, shape index: {}]   ;;  %s413_s1 = inlined_call_operand.vmem [shape: f32[2,8], index: 1, kind: input, shape index: {}]   ;;  %s414_s2 = inlined_call_operand.vmem [shape: f32[1,8], index: 2, kind: input, shape index: {}]   ;;  %s415_s3 = inlined_call_operand.vmem [shape: f32[1,8], index: 3, kind: input, shape index: {}]   ;;  %s416_s4 = inlined_call_operand.<no memory space> [shape: f32[1,1], index: 4, kind: input, shape index: {}]   ;;  %s417_s5 = inlined_call_operand.vmem [shape: f32[8,1], index: 5, kind: output, shape index: {}]  }
   0x1   :  { %12 = vsyncpa [#allocation6], 0  ;;  %s31_s20 = sshll.u32 %s414_s2, 4  ;;  %s21_s23 = sshll.u32 %s413_s1, 4  ;;  %s32_s20 = int_to_ptr.vmem [resolvable:$true] %s31_s20  ;;  %s22_s23 = int_to_ptr.vmem [resolvable:$true] %s21_s23 }
   0x2   :  { %s223_s24 = scalar_lea.vmem %s32_s20, 16  ;;  %p228_p1 = scmp.lt.s32.totalorder %s32_s20, %s32_s20 }
   0x3   :  { %p224_p0 = scmp.ne.s32.totalorder %s32_s20, %s223_s24  ;;  %p229_p2 = scmp.lt.s32.totalorder %s223_s24, %s223_s24 }
   0x5   :  { %p230_p3 = por %p229_p2, %p228_p1 }
   0x7   :  { %p231_p4 = pnand %p230_p3, %p224_p0 }
   0x9   :  { %234 = shalt.err (!%p231_p4)
}
   0xa   :  { %s263_s25 = smov [#allocation5]   ;;  %s235_s26 = scalar_lea.vmem %s22_s23, 32 }
   0xb   :  { %34 = dma.vmem_to_smem %s32_s20, 16, %s263_s25, [#allocation6]  }
   0xc   :  { %p236_p5 = scmp.ne.s32.totalorder %s22_s23, %s235_s26  ;;  %p240_p6 = scmp.lt.s32.totalorder %s22_s23, %s22_s23 }
   0xd   :  { %p241_p7 = scmp.lt.s32.totalorder %s235_s26, %s235_s26 }
   0xf   :  { %p242_p8 = por %p241_p7, %p240_p6 }
  0x11   :  { %p243_p9 = pnand %p242_p8, %p236_p5 }
  0x13   :  { %246 = shalt.err (!%p243_p9)
}
  0x14   :  { %s264_s2 = smov [#allocation3]   ;;  %s41_s28 = sshll.u32 %s415_s3, 4  ;;  %s42_s28 = int_to_ptr.vmem [resolvable:$true] %s41_s28 }
  0x15   :  { %24 = dma.vmem_to_smem %s22_s23, 32, %s264_s2, [#allocation4]  }
  0x16   :  { %s247_s29 = scalar_lea.vmem %s42_s28, 16  ;;  %p252_p11 = scmp.lt.s32.totalorder %s42_s28, %s42_s28 }
  0x17   :  { %p248_p10 = scmp.ne.s32.totalorder %s42_s28, %s247_s29  ;;  %p253_p12 = scmp.lt.s32.totalorder %s247_s29, %s247_s29 }
  0x19   :  { %p254_p13 = por %p253_p12, %p252_p11 }
  0x1b   :  { %p255_p0 = pnand %p254_p13, %p248_p10 }
  0x1d   :  { %258 = shalt.err (!%p255_p0)
}
  0x1e   :  { %s265_s30 = smov [#allocation7]  }
  0x1f   :  { %44 = dma.vmem_to_smem %s42_s28, 16, %s265_s30, [#allocation6]  }
  0x20   :  { %259 = dma.done.wait [#allocation4], 32  }
  0x21   :  { %260 = vsyncadd [#allocation4], 4294967264 }
  0x22   :  { %261 = dma.done.wait [#allocation6], 32  }
  0x23   :  { %262 = vsyncadd [#allocation6], 4294967264 }
  0x24   :  { %56 = sfence }
  0x25   :  { %s60_s6 = sld [smem:[#allocation3]]  ;;  %s192_s9 = sld [smem:[#allocation3 + $0x1]]  ;;  %v316_v0 = vld [vmem:[%s412_s0] sm:$0xff]  ;;  %v321_v1 = vld [vmem:[%s412_s0 + $0x8] sm:$0xff]  ;;  %v75_v12 = vstv %s416_s4  ;;  %vm182_vm0 = vcmask 7168  }
  0x26   :  { %s191_s7 = sld [smem:[#allocation3 + $0x80]]  ;;  %s193_s10 = sld [smem:[#allocation3 + $0x81]] }
  0x27   :  { %s305_s8 = sld [smem:[#allocation5]]  ;;  %s309_s11 = sld [smem:[#allocation5 + $0x1]] }
  0x28   :  { %s307_s3 = sld [smem:[#allocation7]]  ;;  %s311_s12 = sld [smem:[#allocation7 + $0x1]] }
  0x29   :  { %s196_s17 = sld [smem:[#allocation3 + $0x2]]  ;;  %s327_s21 = sld [smem:[#allocation3 + $0x3]] }
  0x2a   :  { %s197_s18 = sld [smem:[#allocation3 + $0x82]]  ;;  %s329_s22 = sld [smem:[#allocation3 + $0x83]] }
  0x2b   :  { %s323_s19 = sld [smem:[#allocation5 + $0x2]]  ;;  %v61_v2 = vstv %s60_s6  ;;  %s333_s23 = sld [smem:[#allocation5 + $0x3]]  ;;  %v78_v7 = vstv %s192_s9 }
  0x2c   :  { %s325_s20 = sld [smem:[#allocation7 + $0x2]]  ;;  %v64_v3 = vstv %s191_s7  ;;  %v62_v4 = vmul.f32 %v61_v2, %v316_v0  ;;  %s335_s0 = sld [smem:[#allocation7 + $0x3]]  ;;  %v81_v8 = vstv %s193_s10  ;;  %v79_v10 = vmul.f32 %v78_v7, %v316_v0 }
  0x2d   :  { %v65_v5 = vmul.f32 %v321_v1, %v64_v3  ;;  %v68_v6 = vstv %s305_s8  ;;  %s338_s24 = sld [smem:[#allocation3 + $0x4]]  ;;  %v82_v11 = vmul.f32 %v321_v1, %v81_v8  ;;  %v85_v13 = vstv %s309_s11  ;;  %s350_s27 = sld [smem:[#allocation3 + $0x5]] }
  0x2e   :  { %s340_s25 = sld [smem:[#allocation3 + $0x84]]  ;;  %s352_s28 = sld [smem:[#allocation3 + $0x85]]  ;;  %v72_v20 = vstv %s307_s3  ;;  %v89_v28 = vstv %s311_s12 }
  0x2f   :  { %v66_v9 = vadd.f32 %v65_v5, %v62_v4  ;;  %s344_s26 = sld [smem:[#allocation5 + $0x4]]  ;;  %v93_v14 = vstv %s196_s17  ;;  %v83_v17 = vadd.f32 %v82_v11, %v79_v10  ;;  %v108_v22 = vstv %s327_s21  ;;  %s360_s4 = sld [smem:[#allocation5 + $0x5]] }
  0x30   :  { %v96_v15 = vstv %s197_s18  ;;  %v94_v18 = vmul.f32 %v93_v14, %v316_v0  ;;  %v111_v23 = vstv %s329_s22  ;;  %s362_s29 = sld [smem:[#allocation3 + $0x6]]  ;;  %v109_v27 = vmul.f32 %v108_v22, %v316_v0  ;;  %s371_s6 = sld [smem:[#allocation7 + $0x4]] }
  0x31   :  { %v69_v16 = vadd.f32 %v68_v6, %v66_v9  ;;  %v97_v19 = vmul.f32 %v321_v1, %v96_v15  ;;  %v100_v21 = vstv %s323_s19  ;;  %v86_v25 = vadd.f32 %v85_v13, %v83_v17  ;;  %s365_s30 = sld [smem:[#allocation3 + $0x86]]  ;;  %s376_s8 = sld [smem:[#allocation3 + $0x7]] }
  0x32   :  { %v112_v29 = vmul.f32 %v321_v1, %v111_v23  ;;  %v115_v30 = vstv %s333_s23  ;;  %s373_s7 = sld [smem:[#allocation5 + $0x6]]  ;;  %s378_s3 = sld [smem:[#allocation3 + $0x87]]  ;;  %v104_v36 = vstv %s325_s20  ;;  %v119_v38 = vstv %s335_s0 }
  0x33   :  { %v70_v24 = vmax.f32 %v69_v16, 0.0  ;;  %v98_v26 = vadd.f32 %v97_v19, %v94_v18  ;;  %v123_v31 = vstv %s338_s24  ;;  %v87_v33 = vmax.f32 %v86_v25, 0.0  ;;  %s384_s9 = sld [smem:[#allocation7 + $0x5]]  ;;  %s389_s10 = sld [smem:[#allocation5 + $0x7]] }
  0x34   :  { %v124_v35 = vmul.f32 %v123_v31, %v316_v0  ;;  %v113_v37 = vadd.f32 %v112_v29, %v109_v27  ;;  %v126_v39 = vstv %s340_s25  ;;  %v138_v46 = vstv %s350_s27  ;;  %s392_s11 = sld [smem:[#allocation7 + $0x6]]  ;;  %s219_s12 = sld [smem:[#allocation7 + $0x7]] }
  0x35   :  { %v73_v32 = vmul.f32 %v72_v20, %v70_v24  ;;  %v101_v34 = vadd.f32 %v100_v21, %v98_v26  ;;  %v90_v41 = vmul.f32 %v89_v28, %v87_v33  ;;  %v127_v43 = vmul.f32 %v321_v1, %v126_v39 }
  0x36   :  { %v116_v44 = vadd.f32 %v115_v30, %v113_v37  ;;  %v130_v45 = vstv %s344_s26  ;;  %v141_v47 = vstv %s352_s28  ;;  %v139_v51 = vmul.f32 %v138_v46, %v316_v0 }
  0x37   :  { %v76_v40 = vadd.f32 %v75_v12, %v73_v32  ;;  %v102_v42 = vmax.f32 %v101_v34, 0.0  ;;  %v128_v50 = vadd.f32 %v127_v43, %v124_v35  ;;  %v142_v53 = vmul.f32 %v321_v1, %v141_v47 }
  0x38   :  { %v117_v52 = vmax.f32 %v116_v44, 0.0  ;;  %v145_v54 = vstv %s360_s4  ;;  %v153_v55 = vstv %s362_s29  ;;  %v156_v59 = vstv %s365_s30 }
  0x39   :  { %v91_v48 = vadd.f32 %v90_v41, %v76_v40  ;;  %v105_v49 = vmul.f32 %v104_v36, %v102_v42  ;;  %v131_v57 = vadd.f32 %v130_v45, %v128_v50  ;;  %v154_v58 = vmul.f32 %v153_v55, %v316_v0 }
  0x3a   :  { %v120_v60 = vmul.f32 %v119_v38, %v117_v52  ;;  %v134_v61 = vstv %s371_s6  ;;  %v143_v62 = vadd.f32 %v142_v53, %v139_v51  ;;  %v157_v63 = vmul.f32 %v321_v1, %v156_v59 }
  0x3b   :  { %v106_v56 = vadd.f32 %v105_v49, %v91_v48  ;;  %v132_v2 = vmax.f32 %v131_v57, 0.0  ;;  %v160_v3 = vstv %s373_s7  ;;  %v168_v4 = vstv %s376_s8 }
  0x3c   :  { %v171_v5 = vstv %s378_s3  ;;  %v146_v7 = vadd.f32 %v145_v54, %v143_v62  ;;  %v158_v8 = vadd.f32 %v157_v63, %v154_v58  ;;  %v169_v9 = vmul.f32 %v168_v4, %v316_v0 }
  0x3d   :  { %v121_v6 = vadd.f32 %v120_v60, %v106_v56  ;;  %v135_v10 = vmul.f32 %v134_v61, %v132_v2  ;;  %v149_v11 = vstv %s384_s9  ;;  %v172_v12 = vmul.f32 %v321_v1, %v171_v5 }
  0x3e   :  { %v147_v13 = vmax.f32 %v146_v7, 0.0  ;;  %v161_v14 = vadd.f32 %v160_v3, %v158_v8  ;;  %v175_v15 = vstv %s389_s10  ;;  %v164_v17 = vstv %s392_s11 }
  0x3f   :  { %v136_v16 = vadd.f32 %v135_v10, %v121_v6  ;;  %v173_v18 = vadd.f32 %v172_v12, %v169_v9  ;;  %v179_v24 = vstv %s219_s12 }
  0x40   :  { %v150_v19 = vmul.f32 %v149_v11, %v147_v13  ;;  %v162_v20 = vmax.f32 %v161_v14, 0.0 }
  0x41   :  { %v176_v21 = vadd.f32 %v175_v15, %v173_v18 }
  0x42   :  { %v151_v22 = vadd.f32 %v150_v19, %v136_v16  ;;  %v165_v23 = vmul.f32 %v164_v17, %v162_v20 }
  0x43   :  { %v177_v25 = vmax.f32 %v176_v21, 0.0 }
  0x44   :  { %v166_v26 = vadd.f32 %v165_v23, %v151_v22 }
  0x45   :  { %v180_v27 = vmul.f32 %v179_v24, %v177_v25 }
  0x47   :  { %v181_v0 = vadd.f32 %v180_v27, %v166_v26 }
  0x49   :  { %183 = vst.msk [vmem:[%s417_s5] sm:$0xff] %vm182_vm0, %v181_v0 }
  0x4a   :  { %188 = vsyncpa [#allocation4], 1 }
  0x4b   :  { %189 = vsyncpa [#allocation6], 1 }

</bundles_post_ra>
